<compile_context>
chip_gen: v7x
topology: tpu7x:2x2x1
jax: 0.10.0
libtpu: 0.0.40
codegen_flags: <defaults>
</compile_context>

<pallas_src>
import functools

import jax
import jax.numpy as jnp
from jax.experimental import pallas as pl
from jax.experimental.pallas import tpu as pltpu


def _round_up(a, b):
    return (a + b - 1) // b * b


def _layernorm_kernel(x_ref, gamma_ref, beta_ref, o_ref, *, eps, true_d):
    # x_ref: (TM, D_pad) tile in native dtype; gamma/beta: (1, D_pad).
    x = x_ref[...].astype(jnp.float32)            # single upcast; math in f32
    inv_d = 1.0 / true_d                          # divide by the TRUE d_model
    s = jnp.sum(x, axis=-1, keepdims=True)        # one pass over x for both
    s2 = jnp.sum(x * x, axis=-1, keepdims=True)   # moments (no mean->xc->var chain)
    mean = s * inv_d
    var = jnp.maximum(s2 * inv_d - mean * mean, 0.0)   # clamp vs cancellation
    inv = jax.lax.rsqrt(var + eps)                # EUP; (TM, 1)
    out = (x - mean) * inv
    out = gamma_ref[...].astype(jnp.float32) * out + beta_ref[...].astype(jnp.float32)
    o_ref[...] = out.astype(o_ref.dtype)


def _pick_tile_rows(rows, d_pad, dtype):
    """Choose TM: fits the true VMEM working set, >= ~16 grid steps, TM >= ~256."""
    dtype_bytes = jnp.dtype(dtype).itemsize
    # packed sublane count: 8 for f32, 16 for bf16, 32 for int8/fp8
    pack = max(8, 32 // dtype_bytes)
    if rows <= pack:
        return int(rows)                           # block == full row extent (legal)

    # Per-step working set per row:
    #   4 * itemsize * D   (in + out, each double-buffered, native dtype)
    # + 8 * D              (~2 (TM, D) f32 temporaries inside the body)
    per_row = (4 * dtype_bytes + 8) * d_pad
    budget = 32 * 1024 * 1024                      # fits v7x 64 MiB/TC with headroom
    tm_vmem = max(pack, min(1024, (budget // per_row) // pack * pack))

    # Target >= ~16 grid steps (>= ~8 per TensorCore on v7x), but keep TM >= ~256
    # rows so per-step overhead stays amortized (512-row tiles already ~85% of
    # HBM roofline).
    tm_steps = _round_up(max(1, -(-rows // 16)), pack)
    tm = min(tm_vmem, max(tm_steps, min(256, tm_vmem)))
    tm = min(tm, _round_up(rows, pack))            # never exceed the row extent
    return int(max(pack, tm))


def layer_norm(x, gamma, beta, *, eps=1e-12, tile_rows=None):
    """x: (..., d_model); gamma, beta: (d_model,). Returns same shape/dtype as x."""
    orig_shape = x.shape
    d_model = int(orig_shape[-1])
    rows = 1
    for s in orig_shape[:-1]:
        rows *= int(s)

    x2 = x.reshape(rows, d_model)
    gamma2 = gamma.reshape(1, d_model)
    beta2 = beta.reshape(1, d_model)

    # Lane-dense layout: pad D to a multiple of 128 (zeros keep sum / sum-of-
    # squares exact; padded gamma/beta lanes are 0 and get sliced off).
    d_pad = _round_up(d_model, 128)
    if d_pad != d_model:
        pad = d_pad - d_model
        x2 = jnp.pad(x2, ((0, 0), (0, pad)))
        gamma2 = jnp.pad(gamma2, ((0, 0), (0, pad)))
        beta2 = jnp.pad(beta2, ((0, 0), (0, pad)))

    dtype_bytes = jnp.dtype(x.dtype).itemsize
    tm = tile_rows if tile_rows is not None else _pick_tile_rows(rows, d_pad, x.dtype)
    grid = (pl.cdiv(rows, tm),)                    # partial last block masked by Pallas

    # True per-step footprint: double-buffered in + out (native dtype) plus the
    # in-kernel f32 working set, plus params and headroom.  Cap below the
    # smallest physical VMEM (v7x: 64 MiB/TC).
    tile_io_bytes = tm * d_pad * dtype_bytes
    f32_tile_bytes = tm * d_pad * 4
    need = 4 * tile_io_bytes + 2 * f32_tile_bytes + (4 << 20)
    vmem_limit = int(min(56 << 20, max(16 << 20, need)))

    cost = pl.CostEstimate(
        flops=9 * rows * d_model,
        transcendentals=rows,
        bytes_accessed=2 * rows * d_model * dtype_bytes
        + 2 * d_model * jnp.dtype(gamma.dtype).itemsize,
    )

    out = pl.pallas_call(
        functools.partial(_layernorm_kernel, eps=eps, true_d=d_model),
        out_shape=jax.ShapeDtypeStruct((rows, d_pad), x.dtype),
        grid_spec=pltpu.PrefetchScalarGridSpec(
            num_scalar_prefetch=0,
            grid=grid,
            in_specs=[
                pl.BlockSpec((tm, d_pad), lambda i: (i, 0)),
                pl.BlockSpec((1, d_pad), lambda i: (0, 0)),
                pl.BlockSpec((1, d_pad), lambda i: (0, 0)),
            ],
            out_specs=pl.BlockSpec((tm, d_pad), lambda i: (i, 0)),
        ),
        compiler_params=pltpu.CompilerParams(
            dimension_semantics=("parallel",),
            vmem_limit_bytes=vmem_limit,
        ),
        cost_estimate=cost,
    )(x2, gamma2, beta2)

    if d_pad != d_model:
        out = out[:, :d_model]
    return out.reshape(orig_shape)


if __name__ == "__main__":
    key = jax.random.PRNGKey(0)
    batch, seq, d_model = 2, 8, 32
    x = jax.random.normal(key, (batch, seq, d_model), dtype=jnp.float32)

    # deterministic parameter init matching nn.Parameter(ones)/(zeros)
    gamma = jnp.ones((d_model,), jnp.float32)
    beta = jnp.zeros((d_model,), jnp.float32)

    out = layer_norm(x, gamma, beta, eps=1e-12)
    out = jax.block_until_ready(out)

    # reference check in plain JAX (same math as the torch module)
    mean = x.mean(-1, keepdims=True)
    var = ((x - mean) ** 2).mean(-1, keepdims=True)
    ref = gamma * ((x - mean) / jnp.sqrt(var + 1e-12)) + beta
    assert jnp.allclose(out, ref, atol=1e-5, rtol=1e-5), "mismatch vs reference"

    print("KERNEL_OK")
</pallas_src>

<mosaic_0001>
module attributes {stable_mosaic.version = 11 : i64} {
  func.func @_layernorm_kernel(%arg0: i32, %arg1: memref<16x128xf32, #tpu.memory_space<vmem>>, %arg2: memref<1x128xf32, #tpu.memory_space<vmem>>, %arg3: memref<1x128xf32, #tpu.memory_space<vmem>>, %arg4: memref<16x128xf32, #tpu.memory_space<vmem>>) attributes {dimension_semantics = [#tpu.dimension_semantics<parallel>], iteration_bounds = array<i64: 1>, scalar_prefetch = 0 : i64, scratch_operands = 0 : i64, tpu.core_type = #tpu.core_type<tc>, window_params = [{transform_indices = @transform_0, window_bounds = array<i64: 16, 128>}, {pipeline_mode = #tpu.pipeline_mode<synchronous>, transform_indices = @transform_1, window_bounds = array<i64: 1, 128>}, {pipeline_mode = #tpu.pipeline_mode<synchronous>, transform_indices = @transform_2, window_bounds = array<i64: 1, 128>}, {transform_indices = @transform_3, window_bounds = array<i64: 16, 128>}]} {
    %c0 = arith.constant 0 : index
    %c0_0 = arith.constant 0 : index
    %0 = vector.load %arg1[%c0, %c0_0] : memref<16x128xf32, #tpu.memory_space<vmem>>, vector<16x128xf32>
    %cst = arith.constant dense<0.000000e+00> : vector<16xf32>
    %1 = vector.multi_reduction <add>, %0, %cst [1] : vector<16x128xf32> to vector<16xf32>
    %2 = vector.shape_cast %1 : vector<16xf32> to vector<16x1xf32>
    %3 = arith.mulf %0, %0 : vector<16x128xf32>
    %cst_1 = arith.constant dense<0.000000e+00> : vector<16xf32>
    %4 = vector.multi_reduction <add>, %3, %cst_1 [1] : vector<16x128xf32> to vector<16xf32>
    %5 = vector.shape_cast %4 : vector<16xf32> to vector<16x1xf32>
    %cst_2 = arith.constant 3.125000e-02 : f32
    %6 = vector.broadcast %cst_2 : f32 to vector<16x1xf32>
    %7 = arith.mulf %2, %6 : vector<16x1xf32>
    %cst_3 = arith.constant 3.125000e-02 : f32
    %8 = vector.broadcast %cst_3 : f32 to vector<16x1xf32>
    %9 = arith.mulf %5, %8 : vector<16x1xf32>
    %10 = arith.mulf %7, %7 : vector<16x1xf32>
    %11 = arith.subf %9, %10 : vector<16x1xf32>
    %cst_4 = arith.constant 0.000000e+00 : f32
    %12 = vector.broadcast %cst_4 : f32 to vector<16x1xf32>
    %13 = arith.maximumf %11, %12 : vector<16x1xf32>
    %cst_5 = arith.constant 9.99999996E-13 : f32
    %14 = vector.broadcast %cst_5 : f32 to vector<16x1xf32>
    %15 = arith.addf %13, %14 : vector<16x1xf32>
    %16 = math.rsqrt %15 : vector<16x1xf32>
    %17 = vector.broadcast %7 : vector<16x1xf32> to vector<16x128xf32>
    %18 = arith.subf %0, %17 : vector<16x128xf32>
    %19 = vector.broadcast %16 : vector<16x1xf32> to vector<16x128xf32>
    %20 = arith.mulf %18, %19 : vector<16x128xf32>
    %c0_6 = arith.constant 0 : index
    %c0_7 = arith.constant 0 : index
    %21 = vector.load %arg2[%c0_6, %c0_7] : memref<1x128xf32, #tpu.memory_space<vmem>>, vector<1x128xf32>
    %22 = vector.broadcast %21 : vector<1x128xf32> to vector<16x128xf32>
    %23 = arith.mulf %22, %20 : vector<16x128xf32>
    %c0_8 = arith.constant 0 : index
    %c0_9 = arith.constant 0 : index
    %24 = vector.load %arg3[%c0_8, %c0_9] : memref<1x128xf32, #tpu.memory_space<vmem>>, vector<1x128xf32>
    %25 = vector.broadcast %24 : vector<1x128xf32> to vector<16x128xf32>
    %26 = arith.addf %23, %25 : vector<16x128xf32>
    %c0_10 = arith.constant 0 : index
    %c0_11 = arith.constant 0 : index
    %27 = vector.load %arg4[%c0_10, %c0_11] : memref<16x128xf32, #tpu.memory_space<vmem>>, vector<16x128xf32>
    tpu.vector_store %arg4[%c0_10, %c0_11], %26 {strides = array<i32>} : memref<16x128xf32, #tpu.memory_space<vmem>>, vector<16x128xf32>,
    return
  }
  func.func @transform_0(%arg0: i32) -> (i32, i32) {
    %c0_i32 = arith.constant 0 : i32
    %c0_i32_0 = arith.constant 0 : i32
    return %arg0, %c0_i32 : i32, i32
  }
  func.func @transform_1(%arg0: i32) -> (i32, i32) {
    %c0_i32 = arith.constant 0 : i32
    %c0_i32_0 = arith.constant 0 : i32
    %c0_i32_1 = arith.constant 0 : i32
    return %c0_i32, %c0_i32_0 : i32, i32
  }
  func.func @transform_2(%arg0: i32) -> (i32, i32) {
    %c0_i32 = arith.constant 0 : i32
    %c0_i32_0 = arith.constant 0 : i32
    %c0_i32_1 = arith.constant 0 : i32
    return %c0_i32, %c0_i32_0 : i32, i32
  }
  func.func @transform_3(%arg0: i32) -> (i32, i32) {
    %c0_i32 = arith.constant 0 : i32
    %c0_i32_0 = arith.constant 0 : i32
    return %arg0, %c0_i32 : i32, i32
  }
}

</mosaic_0001>

<bundles_post_ra>
// kernel: tpu_custom_call.1
= control target key start
LH: loop header
LB: loop body
LE: loop exit
PB: predicated region body
PF: predicated region fallthrough
CT: control target
= control target key end

     0   :  { %8 = vsyncpa [#allocation3], 0  ;;  %s214_s0 = inlined_call_operand.hbm [shape: f32[16,128], index: 0, kind: input, shape index: {}]   ;;  %s215_s1 = inlined_call_operand.vmem [shape: f32[1,128], index: 1, kind: input, shape index: {}]   ;;  %s216_s2 = inlined_call_operand.vmem [shape: f32[1,128], index: 2, kind: input, shape index: {}]   ;;  %s217_s3 = inlined_call_operand.hbm [shape: f32[16,128], index: 3, kind: output, shape index: {}]  }
   0x1   :  { %9 = vsyncpa [#allocation4], 0  ;;  %s154_s12 = smov [#allocation2]   ;;  %s106_s16 = scalar_lea.hbm %s214_s0, 256 }
   0x2   :  { %s15_s13 = sshll.u32 %s154_s12, 4  ;;  %p107_p0 = scmp.ne.s32.totalorder %s214_s0, %s106_s16  ;;  %s16_s13 = int_to_ptr.vmem [resolvable:$true] %s15_s13 }
   0x3   :  { %p110_p1 = scmp.lt.u32.totalorder %s106_s16, %s214_s0 }
   0x5   :  { %p112_p2 = pnand %p110_p1, %p107_p0 }
   0x7   :  { %115 = shalt.err (!%p112_p2)
}
   0x8   :  { %s116_s21 = scalar_lea.vmem %s16_s13, 256  ;;  %p121_p4 = scmp.lt.s32.totalorder %s16_s13, %s16_s13 }
   0x9   :  { %p117_p3 = scmp.ne.s32.totalorder %s16_s13, %s116_s21  ;;  %p122_p5 = scmp.lt.s32.totalorder %s116_s21, %s116_s21 }
   0xb   :  { %p123_p6 = por %p122_p5, %p121_p4 }
   0xd   :  { %p124_p7 = pnand %p123_p6, %p117_p3 }
   0xf   :  { %127 = shalt.err (!%p124_p7)
}
  0x10   :  { %s155_s22 = smov 128   ;;  %s156_s23 = smov 8  }
  0x11   :  { %21 = dma.hbm_to_vmem [thread:$0]  %s214_s0, 256, %s16_s13, [#allocation3], %s155_s22, %s155_s22, %s156_s23  }
  0x12   :  { %150 = dma.done.wait [#allocation3], 256  }
  0x13   :  { %151 = vsyncadd [#allocation3], 4294967040  ;;  %v29_v0 = vld [vmem:[#allocation2] sm:$0xff]  ;;  %v30_v1 = vld [vmem:[#allocation2 + $0x8] sm:$0xff]  ;;  %s157_s29 = smov [#allocation5]  }
  0x14   :  { %31 = vadd.xlane.f32.xlu0 %v29_v0  ;;  %v35_v2 = vmul.f32 %v29_v0, %v29_v0  ;;  %v36_v3 = vmul.f32 %v30_v1, %v30_v1  ;;  %v96_v22 = vld [vmem:[%s215_s1] ss:$0 sm:$0xff]  ;;  %s84_s30 = sshll.u32 %s157_s29, 4  ;;  %s85_s30 = int_to_ptr.vmem [resolvable:$true] %s84_s30 }
  0x15   :  { %v97_v24 = vld [vmem:[%s216_s2] ss:$0 sm:$0xff]  ;;  %s128_s4 = scalar_lea.vmem %s85_s30, 256  ;;  %p133_p9 = scmp.lt.s32.totalorder %s85_s30, %s85_s30 }
  0x16   :  { %37 = vadd.xlane.f32.xlu1 %v35_v2  ;;  %p129_p8 = scmp.ne.s32.totalorder %s85_s30, %s128_s4  ;;  %p134_p10 = scmp.lt.s32.totalorder %s128_s4, %s128_s4 }
  0x18   :  { %33 = vadd.xlane.f32.xlu0 %v30_v1  ;;  %p135_p11 = por %p134_p10, %p133_p9 }
  0x1a   :  { %39 = vadd.xlane.f32.xlu1 %v36_v3  ;;  %p136_p12 = pnand %p135_p11, %p129_p8 }
  0xa1   :  { %v32_v4 = vpop.xlane.xlu0 %31 }
  0xa2   :  { %v41_v5 = vmul.f32 0.03125, %v32_v4 }
  0xa3   :  { %v38_v6 = vpop.xlane.xlu1 %37 }
  0xa4   :  { %v45_v7 = vmul.f32 %v41_v5, %v41_v5  ;;  %v43_v8 = vmul.f32 0.03125, %v38_v6  ;;  %v55_v20 = vsub.f32 %v29_v0, %v41_v5 }
  0xa5   :  { %v34_v9 = vpop.xlane.xlu0 %33 }
  0xa6   :  { %v47_v10 = vsub.f32 %v43_v8, %v45_v7  ;;  %v42_v11 = vmul.f32 0.03125, %v34_v9 }
  0xa7   :  { %v40_v12 = vpop.xlane.xlu1 %39 }
  0xa8   :  { %v49_v13 = vmax.f32 %v47_v10, 0.0  ;;  %v46_v14 = vmul.f32 %v42_v11, %v42_v11  ;;  %v44_v15 = vmul.f32 0.03125, %v40_v12  ;;  %v56_v25 = vsub.f32 %v30_v1, %v42_v11 }
  0xaa   :  { %v51_v16 = vadd.f32 1e-12, %v49_v13  ;;  %v48_v17 = vsub.f32 %v44_v15, %v46_v14 }
  0xac   :  { %102 = vrsqrt.f32 %v51_v16  ;;  %v50_v18 = vmax.f32 %v48_v17, 0.0 }
  0xae   :  { %v52_v19 = vadd.f32 1e-12, %v50_v18 }
  0xb0   :  { %104 = vrsqrt.f32 %v52_v19 }
  0xb6   :  { %v103_v21 = vpop.eup %102 }
  0xb7   :  { %v57_v23 = vmul.f32 %v103_v21, %v55_v20 }
  0xb9   :  { %v66_v26 = vmul.f32 %v96_v22, %v57_v23 }
  0xba   :  { %v105_v27 = vpop.eup %104 }
  0xbb   :  { %v58_v28 = vmul.f32 %v105_v27, %v56_v25  ;;  %v75_v29 = vadd.f32 %v97_v24, %v66_v26 }
  0xbd   :  { %v67_v30 = vmul.f32 %v96_v22, %v58_v28  ;;  %77 = vst [vmem:[#allocation5] sm:$0xff] %v75_v29 }
  0xbf   :  { %v76_v31 = vadd.f32 %v97_v24, %v67_v30 }
  0xc1   :  { %78 = vst [vmem:[#allocation5 + $0x8] sm:$0xff] %v76_v31 }
  0xc2   :  { %139 = shalt.err (!%p136_p12)
}
  0xc3   :  { %s140_s5 = scalar_lea.hbm %s217_s3, 256 }
  0xc4   :  { %p141_p13 = scmp.ne.s32.totalorder %s217_s3, %s140_s5  ;;  %p144_p0 = scmp.lt.u32.totalorder %s140_s5, %s217_s3 }
  0xc6   :  { %p146_p1 = pnand %p144_p0, %p141_p13 }
  0xc8   :  { %149 = shalt.err (!%p146_p1)
}
  0xc9   :  { %90 = dma.vmem_to_hbm [thread:$0]  %s85_s30, 256, %s217_s3, [#allocation4], %s155_s22, %s155_s22, %s156_s23  }
  0xca   :  { %152 = dma.done.wait [#allocation4], 256  }
  0xcb   :  { %153 = vsyncadd [#allocation4], 4294967040 }
  0xcc   :  { %94 = vsyncpa [#allocation3], 1 }
  0xcd   :  { %95 = vsyncpa [#allocation4], 1 }

</bundles_post_ra>
